<compile_context>
chip_gen: v6e
topology: v6e:2x2x1
jax: 0.10.0
libtpu: 0.0.40
codegen_flags: <defaults>
</compile_context>

<pallas_src>
import functools

import jax
import jax.numpy as jnp
from jax.experimental import pallas as pl
from jax.experimental.pallas import tpu as pltpu


# ----------------------------- Pallas kernel --------------------------------

def eca_block_kernel(x_ref, w1_ref, b1_ref, w2_ref, b2_ref, cm_ref, wk_ref,
                     o_ref, *, W, k_size):
    # x_ref  : (1, C, HW)  input image, channels in sublanes, flat spatial in lanes
    # w1_ref : (9, C, C)   conv1 per-tap weights (Cout, Cin), BN1 scale folded
    # b1_ref : (C, 1)      BN1 bias (f32)
    # w2_ref : (9, C, C)   conv2 per-tap weights, BN2 scale folded
    # b2_ref : (C, 1)      BN2 bias (f32)
    # cm_ref : (2, HW)     column-validity masks: [0] for dx=-1 taps, [1] for dx=+1
    # wk_ref : (k_size,)   ECA 1-D conv taps, SMEM, f32
    # o_ref  : (1, C, HW)  output
    C = x_ref.shape[1]
    HW = x_ref.shape[2]

    x = x_ref[0]                                           # (C, HW)
    cd = x.dtype

    def shift_flat(v, s):
        # z[:, o] = v[:, o + s] when 0 <= o + s < HW, else 0 (zero fill).
        if s == 0:
            return v
        z = jnp.zeros((C, abs(s)), cd)
        if s > 0:
            return jnp.concatenate([v[:, s:], z], axis=1)
        return jnp.concatenate([z, v[:, :HW + s]], axis=1)

    def conv3x3_bn(inp, w_ref, b_ref):
        # 3x3 conv (padding=1, stride=1) + folded-BN bias.  Per-tap matmul
        # (Cout, Cin) @ (Cin, HW): MXU output lanes = HW (lane-dense), f32 acc.
        acc = None
        for t in range(9):
            dy, dx = t // 3 - 1, t % 3 - 1
            src = shift_flat(inp, dy * W + dx)
            # Row validity is handled by the zero fill of the flat shift;
            # column (left/right image border) validity needs the mask.
            if dx == -1:
                src = src * cm_ref[0:1, :]
            elif dx == 1:
                src = src * cm_ref[1:2, :]
            part = jnp.dot(w_ref[t], src, preferred_element_type=jnp.float32)
            acc = part if acc is None else acc + part
        return acc + b_ref[...]                            # (C, HW) f32

    # ---- conv1 -> bn1 (folded) -> relu ----
    h1 = jnp.maximum(conv3x3_bn(x, w1_ref, b1_ref), 0.0)

    # ---- conv2 -> bn2 (folded) ----
    h2 = conv3x3_bn(h1.astype(cd), w2_ref, b2_ref)

    # ---- ECA: global avg pool + k-tap 1-D conv over channels + sigmoid ----
    y = jnp.sum(h2, axis=1, keepdims=True) * (1.0 / HW)    # (C, 1)
    pad_k = (k_size - 1) // 2
    if pad_k > 0:
        zp = jnp.zeros((pad_k, 1), jnp.float32)
        yp = jnp.concatenate([zp, y, zp], axis=0)          # (C + 2p, 1)
    else:
        yp = y
    yc = wk_ref[0] * yp[0:C, :]
    for j in range(1, k_size):
        yc = yc + wk_ref[j] * yp[j:j + C, :]
    att = 1.0 / (1.0 + jnp.exp(-yc))                       # (C, 1)

    # ---- attention scale + residual add + relu ----
    out = jnp.maximum(h2 * att + x.astype(jnp.float32), 0.0)
    o_ref[0] = out.astype(o_ref.dtype)


# ------------------------- one-time parameter folding ------------------------

def fold_eca_block_params(w1_oihw, s1, b1, w2_oihw, s2, b2, wk,
                          compute_dtype=jnp.float32):
    """Model-load-time folding (NOT in the forward path): BN scale folded into
    conv weights, OIHW -> per-tap (9, O, I); biases -> (O, 1); ECA taps f32."""
    def fold(w, s):
        o, i = w.shape[0], w.shape[1]
        return (jnp.transpose(w, (2, 3, 0, 1)) * s[None, None, :, None]) \
            .reshape(9, o, i).astype(compute_dtype)
    return (fold(w1_oihw, s1),
            jnp.asarray(b1, jnp.float32).reshape(-1, 1),
            fold(w2_oihw, s2),
            jnp.asarray(b2, jnp.float32).reshape(-1, 1),
            jnp.asarray(wk, jnp.float32))


# ------------------------------- forward wrapper -----------------------------

@functools.partial(jax.jit,
                   static_argnames=("k_size", "compute_dtype", "out_dtype"))
def eca_basic_block(x_nchw, w1f, b1r, w2f, b2r, wk32, *,
                    k_size=3, compute_dtype=jnp.float32, out_dtype=None):
    N, C, H, W = x_nchw.shape
    HW = H * W
    cd = compute_dtype
    od = cd if out_dtype is None else out_dtype

    # NCHW is already channels-in-sublanes / spatial-in-lanes: the reshape is
    # free (no transpose, no extra HBM pass).
    x2 = x_nchw.reshape(N, C, HW).astype(cd)

    # Column-validity masks for the left / right conv taps.
    col = jnp.arange(HW, dtype=jnp.int32) % W
    cmask = jnp.stack([col >= 1, col <= W - 2], axis=0).astype(cd)   # (2, HW)

    # Explicit VMEM budget: double-buffered blocks + f32 temporaries + headroom.
    isz_c, isz_o = jnp.dtype(cd).itemsize, jnp.dtype(od).itemsize
    act = C * HW
    working = (2 * act * isz_c                 # x block, double buffered
               + 2 * act * isz_o               # out block, double buffered
               + 2 * 2 * 9 * C * C * isz_c     # w1 + w2 (TODO: pl.Buffered(1))
               + 2 * 2 * C * 4                 # biases
               + 2 * 2 * HW * isz_c            # column masks
               + 8 * act * 4)                  # f32 h1/h2/acc + shift temporaries
    vmem_limit = int(min(max(2 * working, 32 * 1024 * 1024), 64 * 1024 * 1024))

    kernel = functools.partial(eca_block_kernel, W=W, k_size=k_size)

    out2 = pl.pallas_call(
        kernel,
        out_shape=jax.ShapeDtypeStruct((N, C, HW), od),
        grid_spec=pltpu.PrefetchScalarGridSpec(
            num_scalar_prefetch=0,
            grid=(N,),
            in_specs=[
                pl.BlockSpec((1, C, HW), lambda n: (n, 0, 0)),      # x
                pl.BlockSpec((9, C, C), lambda n: (0, 0, 0)),       # w1 folded
                pl.BlockSpec((C, 1), lambda n: (0, 0)),             # b1
                pl.BlockSpec((9, C, C), lambda n: (0, 0, 0)),       # w2 folded
                pl.BlockSpec((C, 1), lambda n: (0, 0)),             # b2
                pl.BlockSpec((2, HW), lambda n: (0, 0)),            # col masks
                pl.BlockSpec(memory_space=pltpu.MemorySpace.SMEM),  # ECA taps
            ],
            out_specs=pl.BlockSpec((1, C, HW), lambda n: (n, 0, 0)),
        ),
        compiler_params=pltpu.CompilerParams(
            dimension_semantics=("parallel",),
            vmem_limit_bytes=vmem_limit),
    )(x2, w1f, b1r, w2f, b2r, cmask, wk32)

    return out2.reshape(N, C, H, W)


# --------------------------- pure-JAX reference ------------------------------

def ref_forward(x, w1, s1, b1, w2, s2, b2, wk, k_size):
    dn = ('NCHW', 'OIHW', 'NCHW')
    out = jax.lax.conv_general_dilated(x, w1, (1, 1), ((1, 1), (1, 1)),
                                       dimension_numbers=dn)
    out = out * s1[None, :, None, None] + b1[None, :, None, None]
    out = jnp.maximum(out, 0.0)
    out = jax.lax.conv_general_dilated(out, w2, (1, 1), ((1, 1), (1, 1)),
                                       dimension_numbers=dn)
    out = out * s2[None, :, None, None] + b2[None, :, None, None]
    # ECA
    C = out.shape[1]
    pad = (k_size - 1) // 2
    y = out.mean(axis=(2, 3))                              # (N, C)
    yp = jnp.pad(y, ((0, 0), (pad, pad)))
    yc = sum(wk[j] * yp[:, j:j + C] for j in range(k_size))
    att = jax.nn.sigmoid(yc)
    out = out * att[:, :, None, None]
    return jnp.maximum(out + x, 0.0)


# ---------------------------------- main --------------------------------------

if __name__ == "__main__":
    N, C, H, W = 2, 4, 16, 16            # inplanes = planes = 4, stride = 1
    k_size = 3
    eps = 1e-5

    key = jax.random.PRNGKey(0)
    ks = jax.random.split(key, 12)

    # conv weights (PyTorch OIHW, kaiming-ish scale), no bias
    w1 = jax.random.normal(ks[0], (C, C, 3, 3), jnp.float32) * (2.0 / (9 * C)) ** 0.5
    w2 = jax.random.normal(ks[1], (C, C, 3, 3), jnp.float32) * (2.0 / (9 * C)) ** 0.5

    # batchnorm params + running stats (inference mode), folded to scale/bias
    gamma1 = 1.0 + 0.1 * jax.random.normal(ks[2], (C,), jnp.float32)
    beta1 = 0.1 * jax.random.normal(ks[3], (C,), jnp.float32)
    mean1 = 0.1 * jax.random.normal(ks[4], (C,), jnp.float32)
    var1 = 0.5 + jnp.abs(jax.random.normal(ks[5], (C,), jnp.float32))
    gamma2 = 1.0 + 0.1 * jax.random.normal(ks[6], (C,), jnp.float32)
    beta2 = 0.1 * jax.random.normal(ks[7], (C,), jnp.float32)
    mean2 = 0.1 * jax.random.normal(ks[8], (C,), jnp.float32)
    var2 = 0.5 + jnp.abs(jax.random.normal(ks[9], (C,), jnp.float32))

    s1 = gamma1 / jnp.sqrt(var1 + eps)
    b1 = beta1 - mean1 * s1
    s2 = gamma2 / jnp.sqrt(var2 + eps)
    b2 = beta2 - mean2 * s2

    # ECA 1-D conv weights (Conv1d(1, 1, k_size, bias=False))
    wk = jax.random.normal(ks[10], (k_size,), jnp.float32) * 0.5

    # input
    x = jax.random.normal(ks[11], (N, C, H, W), jnp.float32)

    # one-time parameter folding (model-load time), outside the forward path
    w1f, b1r, w2f, b2r, wk32 = fold_eca_block_params(
        w1, s1, b1, w2, s2, b2, wk, compute_dtype=jnp.float32)

    out = eca_basic_block(x, w1f, b1r, w2f, b2r, wk32,
                          k_size=k_size, compute_dtype=jnp.float32)
    out = jax.block_until_ready(out)

    ref = jax.block_until_ready(ref_forward(x, w1, s1, b1, w2, s2, b2, wk, k_size))

    max_err = float(jnp.max(jnp.abs(out - ref)))
    assert out.shape == (N, C, H, W)
    assert max_err < 2e-2, f"mismatch vs reference, max abs err = {max_err}"

    print("KERNEL_OK")
</pallas_src>

<mosaic_0001>
module attributes {stable_mosaic.version = 11 : i64} {
  func.func @eca_block_kernel(%arg0: i32, %arg1: memref<1x4x256xf32, #tpu.memory_space<vmem>>, %arg2: memref<9x4x4xf32, #tpu.memory_space<vmem>>, %arg3: memref<4x1xf32, #tpu.memory_space<vmem>>, %arg4: memref<9x4x4xf32, #tpu.memory_space<vmem>>, %arg5: memref<4x1xf32, #tpu.memory_space<vmem>>, %arg6: memref<2x256xf32, #tpu.memory_space<vmem>>, %arg7: memref<3xf32, #tpu.memory_space<smem>>, %arg8: memref<1x4x256xf32, #tpu.memory_space<vmem>>) attributes {dimension_semantics = [#tpu.dimension_semantics<parallel>], iteration_bounds = array<i64: 2>, scalar_prefetch = 0 : i64, scratch_operands = 0 : i64, tpu.core_type = #tpu.core_type<tc>, window_params = [{transform_indices = @transform_0, window_bounds = array<i64: 1, 4, 256>}, {pipeline_mode = #tpu.pipeline_mode<synchronous>, transform_indices = @transform_1, window_bounds = array<i64: 9, 4, 4>}, {pipeline_mode = #tpu.pipeline_mode<synchronous>, transform_indices = @transform_2, window_bounds = array<i64: 4, 1>}, {pipeline_mode = #tpu.pipeline_mode<synchronous>, transform_indices = @transform_3, window_bounds = array<i64: 9, 4, 4>}, {pipeline_mode = #tpu.pipeline_mode<synchronous>, transform_indices = @transform_4, window_bounds = array<i64: 4, 1>}, {pipeline_mode = #tpu.pipeline_mode<synchronous>, transform_indices = @transform_5, window_bounds = array<i64: 2, 256>}, {transform_indices = @transform_6, window_bounds = array<i64: 3>}, {transform_indices = @transform_7, window_bounds = array<i64: 1, 4, 256>}]} {
    %c0 = arith.constant 0 : index
    %c0_0 = arith.constant 0 : index
    %c0_1 = arith.constant 0 : index
    %0 = vector.load %arg1[%c0, %c0_0, %c0_1] : memref<1x4x256xf32, #tpu.memory_space<vmem>>, vector<1x4x256xf32>
    %1 = vector.shape_cast %0 : vector<1x4x256xf32> to vector<4x256xf32>
    %cst = arith.constant 0.000000e+00 : f32
    %2 = vector.broadcast %cst : f32 to vector<4x17xf32>
    %3 = vector.extract_strided_slice %1 {offsets = [0, 0], sizes = [4, 239], strides = [1, 1]} : vector<4x256xf32> to vector<4x239xf32>
    %4 = tpu.concatenate %2, %3 in 1 : vector<4x17xf32>, vector<4x239xf32> -> vector<4x256xf32>
    %c0_2 = arith.constant 0 : index
    %c0_3 = arith.constant 0 : index
    %5 = vector.load %arg6[%c0_2, %c0_3] : memref<2x256xf32, #tpu.memory_space<vmem>>, vector<1x256xf32>
    %6 = vector.broadcast %5 : vector<1x256xf32> to vector<4x256xf32>
    %7 = arith.mulf %4, %6 : vector<4x256xf32>
    %c0_4 = arith.constant 0 : index
    %c0_5 = arith.constant 0 : index
    %c0_6 = arith.constant 0 : index
    %8 = vector.load %arg2[%c0_4, %c0_5, %c0_6] : memref<9x4x4xf32, #tpu.memory_space<vmem>>, vector<1x4x4xf32>
    %9 = vector.shape_cast %8 : vector<1x4x4xf32> to vector<4x4xf32>
    %cst_7 = arith.constant dense<0.000000e+00> : vector<4x256xf32>
    %10 = tpu.matmul %9, %7, %cst_7 {dimension_numbers = #tpu.dot_dimension_numbers<[1], [0], [0], [1], [0, 0, 1, 1], [], []>} : vector<4x4xf32>, vector<4x256xf32>, vector<4x256xf32> -> vector<4x256xf32>
    %cst_8 = arith.constant 0.000000e+00 : f32
    %11 = vector.broadcast %cst_8 : f32 to vector<4x16xf32>
    %12 = vector.extract_strided_slice %1 {offsets = [0, 0], sizes = [4, 240], strides = [1, 1]} : vector<4x256xf32> to vector<4x240xf32>
    %13 = tpu.concatenate %11, %12 in 1 : vector<4x16xf32>, vector<4x240xf32> -> vector<4x256xf32>
    %c1 = arith.constant 1 : index
    %c0_9 = arith.constant 0 : index
    %c0_10 = arith.constant 0 : index
    %14 = vector.load %arg2[%c1, %c0_9, %c0_10] : memref<9x4x4xf32, #tpu.memory_space<vmem>>, vector<1x4x4xf32>
    %15 = vector.shape_cast %14 : vector<1x4x4xf32> to vector<4x4xf32>
    %cst_11 = arith.constant dense<0.000000e+00> : vector<4x256xf32>
    %16 = tpu.matmul %15, %13, %cst_11 {dimension_numbers = #tpu.dot_dimension_numbers<[1], [0], [0], [1], [0, 0, 1, 1], [], []>} : vector<4x4xf32>, vector<4x256xf32>, vector<4x256xf32> -> vector<4x256xf32>
    %17 = arith.addf %10, %16 : vector<4x256xf32>
    %cst_12 = arith.constant 0.000000e+00 : f32
    %18 = vector.broadcast %cst_12 : f32 to vector<4x15xf32>
    %19 = vector.extract_strided_slice %1 {offsets = [0, 0], sizes = [4, 241], strides = [1, 1]} : vector<4x256xf32> to vector<4x241xf32>
    %20 = tpu.concatenate %18, %19 in 1 : vector<4x15xf32>, vector<4x241xf32> -> vector<4x256xf32>
    %c1_13 = arith.constant 1 : index
    %c0_14 = arith.constant 0 : index
    %21 = vector.load %arg6[%c1_13, %c0_14] : memref<2x256xf32, #tpu.memory_space<vmem>>, vector<1x256xf32>
    %22 = vector.broadcast %21 : vector<1x256xf32> to vector<4x256xf32>
    %23 = arith.mulf %20, %22 : vector<4x256xf32>
    %c2 = arith.constant 2 : index
    %c0_15 = arith.constant 0 : index
    %c0_16 = arith.constant 0 : index
    %24 = vector.load %arg2[%c2, %c0_15, %c0_16] : memref<9x4x4xf32, #tpu.memory_space<vmem>>, vector<1x4x4xf32>
    %25 = vector.shape_cast %24 : vector<1x4x4xf32> to vector<4x4xf32>
    %cst_17 = arith.constant dense<0.000000e+00> : vector<4x256xf32>
    %26 = tpu.matmul %25, %23, %cst_17 {dimension_numbers = #tpu.dot_dimension_numbers<[1], [0], [0], [1], [0, 0, 1, 1], [], []>} : vector<4x4xf32>, vector<4x256xf32>, vector<4x256xf32> -> vector<4x256xf32>
    %27 = arith.addf %17, %26 : vector<4x256xf32>
    %cst_18 = arith.constant 0.000000e+00 : f32
    %28 = vector.broadcast %cst_18 : f32 to vector<4x1xf32>
    %29 = vector.extract_strided_slice %1 {offsets = [0, 0], sizes = [4, 255], strides = [1, 1]} : vector<4x256xf32> to vector<4x255xf32>
    %30 = tpu.concatenate %28, %29 in 1 : vector<4x1xf32>, vector<4x255xf32> -> vector<4x256xf32>
    %c0_19 = arith.constant 0 : index
    %c0_20 = arith.constant 0 : index
    %31 = vector.load %arg6[%c0_19, %c0_20] : memref<2x256xf32, #tpu.memory_space<vmem>>, vector<1x256xf32>
    %32 = vector.broadcast %31 : vector<1x256xf32> to vector<4x256xf32>
    %33 = arith.mulf %30, %32 : vector<4x256xf32>
    %c3 = arith.constant 3 : index
    %c0_21 = arith.constant 0 : index
    %c0_22 = arith.constant 0 : index
    %34 = vector.load %arg2[%c3, %c0_21, %c0_22] : memref<9x4x4xf32, #tpu.memory_space<vmem>>, vector<1x4x4xf32>
    %35 = vector.shape_cast %34 : vector<1x4x4xf32> to vector<4x4xf32>
    %cst_23 = arith.constant dense<0.000000e+00> : vector<4x256xf32>
    %36 = tpu.matmul %35, %33, %cst_23 {dimension_numbers = #tpu.dot_dimension_numbers<[1], [0], [0], [1], [0, 0, 1, 1], [], []>} : vector<4x4xf32>, vector<4x256xf32>, vector<4x256xf32> -> vector<4x256xf32>
    %37 = arith.addf %27, %36 : vector<4x256xf32>
    %c4 = arith.constant 4 : index
    %c0_24 = arith.constant 0 : index
    %c0_25 = arith.constant 0 : index
    %38 = vector.load %arg2[%c4, %c0_24, %c0_25] : memref<9x4x4xf32, #tpu.memory_space<vmem>>, vector<1x4x4xf32>
    %39 = vector.shape_cast %38 : vector<1x4x4xf32> to vector<4x4xf32>
    %cst_26 = arith.constant dense<0.000000e+00> : vector<4x256xf32>
    %40 = tpu.matmul %39, %1, %cst_26 {dimension_numbers = #tpu.dot_dimension_numbers<[1], [0], [0], [1], [0, 0, 1, 1], [], []>} : vector<4x4xf32>, vector<4x256xf32>, vector<4x256xf32> -> vector<4x256xf32>
    %41 = arith.addf %37, %40 : vector<4x256xf32>
    %cst_27 = arith.constant 0.000000e+00 : f32
    %42 = vector.broadcast %cst_27 : f32 to vector<4x1xf32>
    %43 = vector.extract_strided_slice %1 {offsets = [0, 1], sizes = [4, 255], strides = [1, 1]} : vector<4x256xf32> to vector<4x255xf32>
    %44 = tpu.concatenate %43, %42 in 1 : vector<4x255xf32>, vector<4x1xf32> -> vector<4x256xf32>
    %c1_28 = arith.constant 1 : index
    %c0_29 = arith.constant 0 : index
    %45 = vector.load %arg6[%c1_28, %c0_29] : memref<2x256xf32, #tpu.memory_space<vmem>>, vector<1x256xf32>
    %46 = vector.broadcast %45 : vector<1x256xf32> to vector<4x256xf32>
    %47 = arith.mulf %44, %46 : vector<4x256xf32>
    %c5 = arith.constant 5 : index
    %c0_30 = arith.constant 0 : index
    %c0_31 = arith.constant 0 : index
    %48 = vector.load %arg2[%c5, %c0_30, %c0_31] : memref<9x4x4xf32, #tpu.memory_space<vmem>>, vector<1x4x4xf32>
    %49 = vector.shape_cast %48 : vector<1x4x4xf32> to vector<4x4xf32>
    %cst_32 = arith.constant dense<0.000000e+00> : vector<4x256xf32>
    %50 = tpu.matmul %49, %47, %cst_32 {dimension_numbers = #tpu.dot_dimension_numbers<[1], [0], [0], [1], [0, 0, 1, 1], [], []>} : vector<4x4xf32>, vector<4x256xf32>, vector<4x256xf32> -> vector<4x256xf32>
    %51 = arith.addf %41, %50 : vector<4x256xf32>
    %cst_33 = arith.constant 0.000000e+00 : f32
    %52 = vector.broadcast %cst_33 : f32 to vector<4x15xf32>
    %53 = vector.extract_strided_slice %1 {offsets = [0, 15], sizes = [4, 241], strides = [1, 1]} : vector<4x256xf32> to vector<4x241xf32>
    %54 = tpu.concatenate %53, %52 in 1 : vector<4x241xf32>, vector<4x15xf32> -> vector<4x256xf32>
    %c0_34 = arith.constant 0 : index
    %c0_35 = arith.constant 0 : index
    %55 = vector.load %arg6[%c0_34, %c0_35] : memref<2x256xf32, #tpu.memory_space<vmem>>, vector<1x256xf32>
    %56 = vector.broadcast %55 : vector<1x256xf32> to vector<4x256xf32>
    %57 = arith.mulf %54, %56 : vector<4x256xf32>
    %c6 = arith.constant 6 : index
    %c0_36 = arith.constant 0 : index
    %c0_37 = arith.constant 0 : index
    %58 = vector.load %arg2[%c6, %c0_36, %c0_37] : memref<9x4x4xf32, #tpu.memory_space<vmem>>, vector<1x4x4xf32>
    %59 = vector.shape_cast %58 : vector<1x4x4xf32> to vector<4x4xf32>
    %cst_38 = arith.constant dense<0.000000e+00> : vector<4x256xf32>
    %60 = tpu.matmul %59, %57, %cst_38 {dimension_numbers = #tpu.dot_dimension_numbers<[1], [0], [0], [1], [0, 0, 1, 1], [], []>} : vector<4x4xf32>, vector<4x256xf32>, vector<4x256xf32> -> vector<4x256xf32>
    %61 = arith.addf %51, %60 : vector<4x256xf32>
    %cst_39 = arith.constant 0.000000e+00 : f32
    %62 = vector.broadcast %cst_39 : f32 to vector<4x16xf32>
    %63 = vector.extract_strided_slice %1 {offsets = [0, 16], sizes = [4, 240], strides = [1, 1]} : vector<4x256xf32> to vector<4x240xf32>
    %64 = tpu.concatenate %63, %62 in 1 : vector<4x240xf32>, vector<4x16xf32> -> vector<4x256xf32>
    %c7 = arith.constant 7 : index
    %c0_40 = arith.constant 0 : index
    %c0_41 = arith.constant 0 : index
    %65 = vector.load %arg2[%c7, %c0_40, %c0_41] : memref<9x4x4xf32, #tpu.memory_space<vmem>>, vector<1x4x4xf32>
    %66 = vector.shape_cast %65 : vector<1x4x4xf32> to vector<4x4xf32>
    %cst_42 = arith.constant dense<0.000000e+00> : vector<4x256xf32>
    %67 = tpu.matmul %66, %64, %cst_42 {dimension_numbers = #tpu.dot_dimension_numbers<[1], [0], [0], [1], [0, 0, 1, 1], [], []>} : vector<4x4xf32>, vector<4x256xf32>, vector<4x256xf32> -> vector<4x256xf32>
    %68 = arith.addf %61, %67 : vector<4x256xf32>
    %cst_43 = arith.constant 0.000000e+00 : f32
    %69 = vector.broadcast %cst_43 : f32 to vector<4x17xf32>
    %70 = vector.extract_strided_slice %1 {offsets = [0, 17], sizes = [4, 239], strides = [1, 1]} : vector<4x256xf32> to vector<4x239xf32>
    %71 = tpu.concatenate %70, %69 in 1 : vector<4x239xf32>, vector<4x17xf32> -> vector<4x256xf32>
    %c1_44 = arith.constant 1 : index
    %c0_45 = arith.constant 0 : index
    %72 = vector.load %arg6[%c1_44, %c0_45] : memref<2x256xf32, #tpu.memory_space<vmem>>, vector<1x256xf32>
    %73 = vector.broadcast %72 : vector<1x256xf32> to vector<4x256xf32>
    %74 = arith.mulf %71, %73 : vector<4x256xf32>
    %c8 = arith.constant 8 : index
    %c0_46 = arith.constant 0 : index
    %c0_47 = arith.constant 0 : index
    %75 = vector.load %arg2[%c8, %c0_46, %c0_47] : memref<9x4x4xf32, #tpu.memory_space<vmem>>, vector<1x4x4xf32>
    %76 = vector.shape_cast %75 : vector<1x4x4xf32> to vector<4x4xf32>
    %cst_48 = arith.constant dense<0.000000e+00> : vector<4x256xf32>
    %77 = tpu.matmul %76, %74, %cst_48 {dimension_numbers = #tpu.dot_dimension_numbers<[1], [0], [0], [1], [0, 0, 1, 1], [], []>} : vector<4x4xf32>, vector<4x256xf32>, vector<4x256xf32> -> vector<4x256xf32>
    %78 = arith.addf %68, %77 : vector<4x256xf32>
    %c0_49 = arith.constant 0 : index
    %c0_50 = arith.constant 0 : index
    %79 = vector.load %arg3[%c0_49, %c0_50] : memref<4x1xf32, #tpu.memory_space<vmem>>, vector<4x1xf32>
    %80 = vector.broadcast %79 : vector<4x1xf32> to vector<4x256xf32>
    %81 = arith.addf %78, %80 : vector<4x256xf32>
    %cst_51 = arith.constant 0.000000e+00 : f32
    %82 = vector.broadcast %cst_51 : f32 to vector<4x256xf32>
    %83 = arith.maximumf %81, %82 : vector<4x256xf32>
    %cst_52 = arith.constant 0.000000e+00 : f32
    %84 = vector.broadcast %cst_52 : f32 to vector<4x17xf32>
    %85 = vector.extract_strided_slice %83 {offsets = [0, 0], sizes = [4, 239], strides = [1, 1]} : vector<4x256xf32> to vector<4x239xf32>
    %86 = tpu.concatenate %84, %85 in 1 : vector<4x17xf32>, vector<4x239xf32> -> vector<4x256xf32>
    %c0_53 = arith.constant 0 : index
    %c0_54 = arith.constant 0 : index
    %87 = vector.load %arg6[%c0_53, %c0_54] : memref<2x256xf32, #tpu.memory_space<vmem>>, vector<1x256xf32>
    %88 = vector.broadcast %87 : vector<1x256xf32> to vector<4x256xf32>
    %89 = arith.mulf %86, %88 : vector<4x256xf32>
    %c0_55 = arith.constant 0 : index
    %c0_56 = arith.constant 0 : index
    %c0_57 = arith.constant 0 : index
    %90 = vector.load %arg4[%c0_55, %c0_56, %c0_57] : memref<9x4x4xf32, #tpu.memory_space<vmem>>, vector<1x4x4xf32>
    %91 = vector.shape_cast %90 : vector<1x4x4xf32> to vector<4x4xf32>
    %cst_58 = arith.constant dense<0.000000e+00> : vector<4x256xf32>
    %92 = tpu.matmul %91, %89, %cst_58 {dimension_numbers = #tpu.dot_dimension_numbers<[1], [0], [0], [1], [0, 0, 1, 1], [], []>} : vector<4x4xf32>, vector<4x256xf32>, vector<4x256xf32> -> vector<4x256xf32>
    %cst_59 = arith.constant 0.000000e+00 : f32
    %93 = vector.broadcast %cst_59 : f32 to vector<4x16xf32>
    %94 = vector.extract_strided_slice %83 {offsets = [0, 0], sizes = [4, 240], strides = [1, 1]} : vector<4x256xf32> to vector<4x240xf32>
    %95 = tpu.concatenate %93, %94 in 1 : vector<4x16xf32>, vector<4x240xf32> -> vector<4x256xf32>
    %c1_60 = arith.constant 1 : index
    %c0_61 = arith.constant 0 : index
    %c0_62 = arith.constant 0 : index
    %96 = vector.load %arg4[%c1_60, %c0_61, %c0_62] : memref<9x4x4xf32, #tpu.memory_space<vmem>>, vector<1x4x4xf32>
    %97 = vector.shape_cast %96 : vector<1x4x4xf32> to vector<4x4xf32>
    %cst_63 = arith.constant dense<0.000000e+00> : vector<4x256xf32>
    %98 = tpu.matmul %97, %95, %cst_63 {dimension_numbers = #tpu.dot_dimension_numbers<[1], [0], [0], [1], [0, 0, 1, 1], [], []>} : vector<4x4xf32>, vector<4x256xf32>, vector<4x256xf32> -> vector<4x256xf32>
    %99 = arith.addf %92, %98 : vector<4x256xf32>
    %cst_64 = arith.constant 0.000000e+00 : f32
    %100 = vector.broadcast %cst_64 : f32 to vector<4x15xf32>
    %101 = vector.extract_strided_slice %83 {offsets = [0, 0], sizes = [4, 241], strides = [1, 1]} : vector<4x256xf32> to vector<4x241xf32>
    %102 = tpu.concatenate %100, %101 in 1 : vector<4x15xf32>, vector<4x241xf32> -> vector<4x256xf32>
    %c1_65 = arith.constant 1 : index
    %c0_66 = arith.constant 0 : index
    %103 = vector.load %arg6[%c1_65, %c0_66] : memref<2x256xf32, #tpu.memory_space<vmem>>, vector<1x256xf32>
    %104 = vector.broadcast %103 : vector<1x256xf32> to vector<4x256xf32>
    %105 = arith.mulf %102, %104 : vector<4x256xf32>
    %c2_67 = arith.constant 2 : index
    %c0_68 = arith.constant 0 : index
    %c0_69 = arith.constant 0 : index
    %106 = vector.load %arg4[%c2_67, %c0_68, %c0_69] : memref<9x4x4xf32, #tpu.memory_space<vmem>>, vector<1x4x4xf32>
    %107 = vector.shape_cast %106 : vector<1x4x4xf32> to vector<4x4xf32>
    %cst_70 = arith.constant dense<0.000000e+00> : vector<4x256xf32>
    %108 = tpu.matmul %107, %105, %cst_70 {dimension_numbers = #tpu.dot_dimension_numbers<[1], [0], [0], [1], [0, 0, 1, 1], [], []>} : vector<4x4xf32>, vector<4x256xf32>, vector<4x256xf32> -> vector<4x256xf32>
    %109 = arith.addf %99, %108 : vector<4x256xf32>
    %cst_71 = arith.constant 0.000000e+00 : f32
    %110 = vector.broadcast %cst_71 : f32 to vector<4x1xf32>
    %111 = vector.extract_strided_slice %83 {offsets = [0, 0], sizes = [4, 255], strides = [1, 1]} : vector<4x256xf32> to vector<4x255xf32>
    %112 = tpu.concatenate %110, %111 in 1 : vector<4x1xf32>, vector<4x255xf32> -> vector<4x256xf32>
    %c0_72 = arith.constant 0 : index
    %c0_73 = arith.constant 0 : index
    %113 = vector.load %arg6[%c0_72, %c0_73] : memref<2x256xf32, #tpu.memory_space<vmem>>, vector<1x256xf32>
    %114 = vector.broadcast %113 : vector<1x256xf32> to vector<4x256xf32>
    %115 = arith.mulf %112, %114 : vector<4x256xf32>
    %c3_74 = arith.constant 3 : index
    %c0_75 = arith.constant 0 : index
    %c0_76 = arith.constant 0 : index
    %116 = vector.load %arg4[%c3_74, %c0_75, %c0_76] : memref<9x4x4xf32, #tpu.memory_space<vmem>>, vector<1x4x4xf32>
    %117 = vector.shape_cast %116 : vector<1x4x4xf32> to vector<4x4xf32>
    %cst_77 = arith.constant dense<0.000000e+00> : vector<4x256xf32>
    %118 = tpu.matmul %117, %115, %cst_77 {dimension_numbers = #tpu.dot_dimension_numbers<[1], [0], [0], [1], [0, 0, 1, 1], [], []>} : vector<4x4xf32>, vector<4x256xf32>, vector<4x256xf32> -> vector<4x256xf32>
    %119 = arith.addf %109, %118 : vector<4x256xf32>
    %c4_78 = arith.constant 4 : index
    %c0_79 = arith.constant 0 : index
    %c0_80 = arith.constant 0 : index
    %120 = vector.load %arg4[%c4_78, %c0_79, %c0_80] : memref<9x4x4xf32, #tpu.memory_space<vmem>>, vector<1x4x4xf32>
    %121 = vector.shape_cast %120 : vector<1x4x4xf32> to vector<4x4xf32>
    %cst_81 = arith.constant dense<0.000000e+00> : vector<4x256xf32>
    %122 = tpu.matmul %121, %83, %cst_81 {dimension_numbers = #tpu.dot_dimension_numbers<[1], [0], [0], [1], [0, 0, 1, 1], [], []>} : vector<4x4xf32>, vector<4x256xf32>, vector<4x256xf32> -> vector<4x256xf32>
    %123 = arith.addf %119, %122 : vector<4x256xf32>
    %cst_82 = arith.constant 0.000000e+00 : f32
    %124 = vector.broadcast %cst_82 : f32 to vector<4x1xf32>
    %125 = vector.extract_strided_slice %83 {offsets = [0, 1], sizes = [4, 255], strides = [1, 1]} : vector<4x256xf32> to vector<4x255xf32>
    %126 = tpu.concatenate %125, %124 in 1 : vector<4x255xf32>, vector<4x1xf32> -> vector<4x256xf32>
    %c1_83 = arith.constant 1 : index
    %c0_84 = arith.constant 0 : index
    %127 = vector.load %arg6[%c1_83, %c0_84] : memref<2x256xf32, #tpu.memory_space<vmem>>, vector<1x256xf32>
    %128 = vector.broadcast %127 : vector<1x256xf32> to vector<4x256xf32>
    %129 = arith.mulf %126, %128 : vector<4x256xf32>
    %c5_85 = arith.constant 5 : index
    %c0_86 = arith.constant 0 : index
    %c0_87 = arith.constant 0 : index
    %130 = vector.load %arg4[%c5_85, %c0_86, %c0_87] : memref<9x4x4xf32, #tpu.memory_space<vmem>>, vector<1x4x4xf32>
    %131 = vector.shape_cast %130 : vector<1x4x4xf32> to vector<4x4xf32>
    %cst_88 = arith.constant dense<0.000000e+00> : vector<4x256xf32>
    %132 = tpu.matmul %131, %129, %cst_88 {dimension_numbers = #tpu.dot_dimension_numbers<[1], [0], [0], [1], [0, 0, 1, 1], [], []>} : vector<4x4xf32>, vector<4x256xf32>, vector<4x256xf32> -> vector<4x256xf32>
    %133 = arith.addf %123, %132 : vector<4x256xf32>
    %cst_89 = arith.constant 0.000000e+00 : f32
    %134 = vector.broadcast %cst_89 : f32 to vector<4x15xf32>
    %135 = vector.extract_strided_slice %83 {offsets = [0, 15], sizes = [4, 241], strides = [1, 1]} : vector<4x256xf32> to vector<4x241xf32>
    %136 = tpu.concatenate %135, %134 in 1 : vector<4x241xf32>, vector<4x15xf32> -> vector<4x256xf32>
    %c0_90 = arith.constant 0 : index
    %c0_91 = arith.constant 0 : index
    %137 = vector.load %arg6[%c0_90, %c0_91] : memref<2x256xf32, #tpu.memory_space<vmem>>, vector<1x256xf32>
    %138 = vector.broadcast %137 : vector<1x256xf32> to vector<4x256xf32>
    %139 = arith.mulf %136, %138 : vector<4x256xf32>
    %c6_92 = arith.constant 6 : index
    %c0_93 = arith.constant 0 : index
    %c0_94 = arith.constant 0 : index
    %140 = vector.load %arg4[%c6_92, %c0_93, %c0_94] : memref<9x4x4xf32, #tpu.memory_space<vmem>>, vector<1x4x4xf32>
    %141 = vector.shape_cast %140 : vector<1x4x4xf32> to vector<4x4xf32>
    %cst_95 = arith.constant dense<0.000000e+00> : vector<4x256xf32>
    %142 = tpu.matmul %141, %139, %cst_95 {dimension_numbers = #tpu.dot_dimension_numbers<[1], [0], [0], [1], [0, 0, 1, 1], [], []>} : vector<4x4xf32>, vector<4x256xf32>, vector<4x256xf32> -> vector<4x256xf32>
    %143 = arith.addf %133, %142 : vector<4x256xf32>
    %cst_96 = arith.constant 0.000000e+00 : f32
    %144 = vector.broadcast %cst_96 : f32 to vector<4x16xf32>
    %145 = vector.extract_strided_slice %83 {offsets = [0, 16], sizes = [4, 240], strides = [1, 1]} : vector<4x256xf32> to vector<4x240xf32>
    %146 = tpu.concatenate %145, %144 in 1 : vector<4x240xf32>, vector<4x16xf32> -> vector<4x256xf32>
    %c7_97 = arith.constant 7 : index
    %c0_98 = arith.constant 0 : index
    %c0_99 = arith.constant 0 : index
    %147 = vector.load %arg4[%c7_97, %c0_98, %c0_99] : memref<9x4x4xf32, #tpu.memory_space<vmem>>, vector<1x4x4xf32>
    %148 = vector.shape_cast %147 : vector<1x4x4xf32> to vector<4x4xf32>
    %cst_100 = arith.constant dense<0.000000e+00> : vector<4x256xf32>
    %149 = tpu.matmul %148, %146, %cst_100 {dimension_numbers = #tpu.dot_dimension_numbers<[1], [0], [0], [1], [0, 0, 1, 1], [], []>} : vector<4x4xf32>, vector<4x256xf32>, vector<4x256xf32> -> vector<4x256xf32>
    %150 = arith.addf %143, %149 : vector<4x256xf32>
    %cst_101 = arith.constant 0.000000e+00 : f32
    %151 = vector.broadcast %cst_101 : f32 to vector<4x17xf32>
    %152 = vector.extract_strided_slice %83 {offsets = [0, 17], sizes = [4, 239], strides = [1, 1]} : vector<4x256xf32> to vector<4x239xf32>
    %153 = tpu.concatenate %152, %151 in 1 : vector<4x239xf32>, vector<4x17xf32> -> vector<4x256xf32>
    %c1_102 = arith.constant 1 : index
    %c0_103 = arith.constant 0 : index
    %154 = vector.load %arg6[%c1_102, %c0_103] : memref<2x256xf32, #tpu.memory_space<vmem>>, vector<1x256xf32>
    %155 = vector.broadcast %154 : vector<1x256xf32> to vector<4x256xf32>
    %156 = arith.mulf %153, %155 : vector<4x256xf32>
    %c8_104 = arith.constant 8 : index
    %c0_105 = arith.constant 0 : index
    %c0_106 = arith.constant 0 : index
    %157 = vector.load %arg4[%c8_104, %c0_105, %c0_106] : memref<9x4x4xf32, #tpu.memory_space<vmem>>, vector<1x4x4xf32>
    %158 = vector.shape_cast %157 : vector<1x4x4xf32> to vector<4x4xf32>
    %cst_107 = arith.constant dense<0.000000e+00> : vector<4x256xf32>
    %159 = tpu.matmul %158, %156, %cst_107 {dimension_numbers = #tpu.dot_dimension_numbers<[1], [0], [0], [1], [0, 0, 1, 1], [], []>} : vector<4x4xf32>, vector<4x256xf32>, vector<4x256xf32> -> vector<4x256xf32>
    %160 = arith.addf %150, %159 : vector<4x256xf32>
    %c0_108 = arith.constant 0 : index
    %c0_109 = arith.constant 0 : index
    %161 = vector.load %arg5[%c0_108, %c0_109] : memref<4x1xf32, #tpu.memory_space<vmem>>, vector<4x1xf32>
    %162 = vector.broadcast %161 : vector<4x1xf32> to vector<4x256xf32>
    %163 = arith.addf %160, %162 : vector<4x256xf32>
    %cst_110 = arith.constant dense<0.000000e+00> : vector<4xf32>
    %164 = vector.multi_reduction <add>, %163, %cst_110 [1] : vector<4x256xf32> to vector<4xf32>
    %165 = vector.shape_cast %164 : vector<4xf32> to vector<4x1xf32>
    %cst_111 = arith.constant 3.906250e-03 : f32
    %166 = vector.broadcast %cst_111 : f32 to vector<4x1xf32>
    %167 = arith.mulf %165, %166 : vector<4x1xf32>
    %cst_112 = arith.constant 0.000000e+00 : f32
    %168 = vector.broadcast %cst_112 : f32 to vector<1x1xf32>
    %169 = tpu.concatenate %168, %167, %168 in 0 : vector<1x1xf32>, vector<4x1xf32>, vector<1x1xf32> -> vector<6x1xf32>
    %c0_113 = arith.constant 0 : index
    %170 = memref.load %arg7[%c0_113] : memref<3xf32, #tpu.memory_space<smem>>
    %171 = vector.extract_strided_slice %169 {offsets = [0, 0], sizes = [4, 1], strides = [1, 1]} : vector<6x1xf32> to vector<4x1xf32>
    %172 = vector.broadcast %170 : f32 to vector<4x1xf32>
    %173 = arith.mulf %172, %171 : vector<4x1xf32>
    %c1_114 = arith.constant 1 : index
    %174 = memref.load %arg7[%c1_114] : memref<3xf32, #tpu.memory_space<smem>>
    %175 = vector.extract_strided_slice %169 {offsets = [1, 0], sizes = [4, 1], strides = [1, 1]} : vector<6x1xf32> to vector<4x1xf32>
    %176 = vector.broadcast %174 : f32 to vector<4x1xf32>
    %177 = arith.mulf %176, %175 : vector<4x1xf32>
    %178 = arith.addf %173, %177 : vector<4x1xf32>
    %c2_115 = arith.constant 2 : index
    %179 = memref.load %arg7[%c2_115] : memref<3xf32, #tpu.memory_space<smem>>
    %180 = vector.extract_strided_slice %169 {offsets = [2, 0], sizes = [4, 1], strides = [1, 1]} : vector<6x1xf32> to vector<4x1xf32>
    %181 = vector.broadcast %179 : f32 to vector<4x1xf32>
    %182 = arith.mulf %181, %180 : vector<4x1xf32>
    %183 = arith.addf %178, %182 : vector<4x1xf32>
    %cst_116 = arith.constant 0.000000e+00 : f32
    %184 = vector.broadcast %cst_116 : f32 to vector<4x1xf32>
    %185 = arith.subf %184, %183 : vector<4x1xf32>
    %186 = math.exp %185 : vector<4x1xf32>
    %cst_117 = arith.constant 1.000000e+00 : f32
    %187 = vector.broadcast %cst_117 : f32 to vector<4x1xf32>
    %188 = arith.addf %187, %186 : vector<4x1xf32>
    %cst_118 = arith.constant 1.000000e+00 : f32
    %189 = vector.broadcast %cst_118 : f32 to vector<4x1xf32>
    %190 = arith.divf %189, %188 : vector<4x1xf32>
    %191 = vector.broadcast %190 : vector<4x1xf32> to vector<4x256xf32>
    %192 = arith.mulf %163, %191 : vector<4x256xf32>
    %193 = arith.addf %192, %1 : vector<4x256xf32>
    %cst_119 = arith.constant 0.000000e+00 : f32
    %194 = vector.broadcast %cst_119 : f32 to vector<4x256xf32>
    %195 = arith.maximumf %193, %194 : vector<4x256xf32>
    %c0_120 = arith.constant 0 : index
    %c0_121 = arith.constant 0 : index
    %c0_122 = arith.constant 0 : index
    %196 = vector.load %arg8[%c0_120, %c0_121, %c0_122] : memref<1x4x256xf32, #tpu.memory_space<vmem>>, vector<1x4x256xf32>
    %197 = vector.shape_cast %196 : vector<1x4x256xf32> to vector<4x256xf32>
    %198 = vector.shape_cast %195 : vector<4x256xf32> to vector<1x4x256xf32>
    tpu.vector_store %arg8[%c0_120, %c0_121, %c0_122], %198 {strides = array<i32>} : memref<1x4x256xf32, #tpu.memory_space<vmem>>, vector<1x4x256xf32>,
    return
  }
  func.func @transform_0(%arg0: i32) -> (i32, i32, i32) {
    %c0_i32 = arith.constant 0 : i32
    %c0_i32_0 = arith.constant 0 : i32
    %c0_i32_1 = arith.constant 0 : i32
    return %arg0, %c0_i32, %c0_i32_0 : i32, i32, i32
  }
  func.func @transform_1(%arg0: i32) -> (i32, i32, i32) {
    %c0_i32 = arith.constant 0 : i32
    %c0_i32_0 = arith.constant 0 : i32
    %c0_i32_1 = arith.constant 0 : i32
    %c0_i32_2 = arith.constant 0 : i32
    return %c0_i32, %c0_i32_0, %c0_i32_1 : i32, i32, i32
  }
  func.func @transform_2(%arg0: i32) -> (i32, i32) {
    %c0_i32 = arith.constant 0 : i32
    %c0_i32_0 = arith.constant 0 : i32
    %c0_i32_1 = arith.constant 0 : i32
    return %c0_i32, %c0_i32_0 : i32, i32
  }
  func.func @transform_3(%arg0: i32) -> (i32, i32, i32) {
    %c0_i32 = arith.constant 0 : i32
    %c0_i32_0 = arith.constant 0 : i32
    %c0_i32_1 = arith.constant 0 : i32
    %c0_i32_2 = arith.constant 0 : i32
    return %c0_i32, %c0_i32_0, %c0_i32_1 : i32, i32, i32
  }
  func.func @transform_4(%arg0: i32) -> (i32, i32) {
    %c0_i32 = arith.constant 0 : i32
    %c0_i32_0 = arith.constant 0 : i32
    %c0_i32_1 = arith.constant 0 : i32
    return %c0_i32, %c0_i32_0 : i32, i32
  }
  func.func @transform_5(%arg0: i32) -> (i32, i32) {
    %c0_i32 = arith.constant 0 : i32
    %c0_i32_0 = arith.constant 0 : i32
    %c0_i32_1 = arith.constant 0 : i32
    return %c0_i32, %c0_i32_0 : i32, i32
  }
  func.func @transform_6(%arg0: i32) -> i32 {
    %c0_i32 = arith.constant 0 : i32
    %c0_i32_0 = arith.constant 0 : i32
    return %c0_i32 : i32
  }
  func.func @transform_7(%arg0: i32) -> (i32, i32, i32) {
    %c0_i32 = arith.constant 0 : i32
    %c0_i32_0 = arith.constant 0 : i32
    %c0_i32_1 = arith.constant 0 : i32
    return %arg0, %c0_i32, %c0_i32_0 : i32, i32, i32
  }
}

</mosaic_0001>

<bundles_post_ra>
// kernel: eca_basic_block.1
= control target key start
LH: loop header
LB: loop body
LE: loop exit
PB: predicated region body
PF: predicated region fallthrough
CT: control target
= control target key end

     0   :  { %12 = vsyncpa [#allocation3], 0  ;;  %s2314_s24 = smov 0   ;;  %s2625_s0 = inlined_call_operand.vmem [shape: f32[2,4,256], index: 0, kind: input, shape index: {}]   ;;  %s2626_s1 = inlined_call_operand.vmem [shape: f32[9,4,4], index: 1, kind: input, shape index: {}]   ;;  %s2627_s2 = inlined_call_operand.vmem [shape: f32[4,1], index: 2, kind: input, shape index: {}]   ;;  %s2628_s3 = inlined_call_operand.vmem [shape: f32[9,4,4], index: 3, kind: input, shape index: {}]   ;;  %s2629_s4 = inlined_call_operand.vmem [shape: f32[4,1], index: 4, kind: input, shape index: {}]   ;;  %s2630_s5 = inlined_call_operand.vmem [shape: f32[2,256], index: 5, kind: input, shape index: {}]   ;;  %s2631_s6 = inlined_call_operand.vmem [shape: f32[3], index: 6, kind: input, shape index: {}]   ;;  %s2632_s7 = inlined_call_operand.vmem [shape: f32[2,4,256], index: 7, kind: output, shape index: {}]  }
   0x1 LB: > { %s2113_s25 = sadd.s32 4294967295, %s2261_s24   ;;  %p2115_p0 = scmp.ge.s32.totalorder %s2261_s24, 1  ;;  %s2261_s24 = sphi %s2314_s24, %s18_s24  }
   0x2   : > { %p201_p1 = scmp.lt.s32.totalorder %s2261_s24, 3  ;;  %s229_s28 = sshll.u32 %s2631_s6, 4  ;;  %s230_s28 = int_to_ptr.vmem [resolvable:$true] %s229_s28 }
   0x3   : > { %p2209_p3 = scmp.eq.s32.totalorder %s2113_s25, 0  ;;  %s2236_s30 = scalar_lea.vmem %s230_s28, 16 }
   0x4   : > { %p2325_p2 = pnand %p2115_p0, %p201_p1  ;;  %p2237_p6 = scmp.ne.s32.totalorder %s230_s28, %s2236_s30 }
   0x5   : > { %p2244_p10 = scmp.lt.s32.totalorder %s230_s28, %s230_s28  ;;  %p2245_p11 = scmp.lt.s32.totalorder %s2236_s30, %s2236_s30 }
   0x6   : > { %p2205_p4 = pneg %p2325_p2 }
   0x7   : > { %p2246_p12 = por %p2245_p11, %p2244_p10 }
   0x8   : > { %p2206_p5 = pnand %p2209_p3, %p2205_p4 }
   0xa   : > { %p2238_p7 = pneg %p2206_p5 }
   0xc   : > { %p2239_p8 = pnand %p2238_p7, %p2237_p6 }
   0xe   : > { %p2240_p9 = pneg %p2239_p8 }
  0x10   : > { %p2247_p13 = pnand %p2246_p12, %p2240_p9 }
  0x12   : > { %2250 = shalt.err (!%p2247_p13)
}
  0x13   : > { %s2263_s8 = smov [#allocation2]   ;;  %250 = sbr.rel (%p2325_p2) target bundleno = 1051 (0x41b), region = 48 }
  0x14   : > { %2208 = dma.vmem_to_smem (!%p2206_p5), %s230_s28, 16, %s2263_s8, [#allocation3]  }
  0x18   : > { %2256 = dma.done.wait (%p2209_p3), [#allocation3], 16  }
  0x19   : > { %2258 = vsyncadd (%p2209_p3), [#allocation3], 4294967280 }
  0x1a   : > { %256 = sfence }
  0x1b   : > { %p283_p0 = scmp.lt.s32.totalorder %s2113_s25, 1  ;;  %v2264_v0 = vmov 0.0   ;;  %s2265_s13 = smov 16   ;;  %v2271_v3 = vmov 0   ;;  %v1152_v4 = vld [vmem:[%s2627_s2] sm:$0xf]  ;;  %v307_v5 = vlaneseq }
  0x1c   : > { %404 = vmatprep.mubr.f32.mxu0 %v2264_v0  ;;  %484 = vmatprep.mubr.f32.mxu1 %v2264_v0  ;;  %s2266_s14 = smov 17   ;;  %s2267_s15 = smov 15   ;;  %vm324_vm0 = vcmask 130048   ;;  %vm334_vm1 = vcmask 1043456   ;;  %vm300_vm2 = vcmask 138240   ;;  %vm495_vm3 = vcmask 121856  }
  0x1d   : > { %s2635_s25 = smov (!%p283_p0, %s2113_s25), 1  ;;  %s2268_s16 = smov 1   ;;  %2230 = vset.pattern.permute.xlu0 %v2271_v3  ;;  %v308_v6 = vshrl.u32 %v307_v5, 7  ;;  %v305_v11 = vld [vmem:[%s2630_s5] ss:$2 sm:$0x3] }
  0x1e   : > { %s2199_s9 = sshll.u32 %s2635_s25, 3  ;;  %s2269_s17 = smov 127   ;;  %v2131_v12 = vld [vmem:[%s2630_s5 + $0x1] ss:$2 sm:$0x3]  ;;  %vm330_vm4 = vcmask 31744  }
  0x1f   : > { %s287_s12 = scalar_lea.vmem %s2625_s0, %s2199_s9  ;;  %s2270_s18 = smov 113   ;;  %v313_v9 = vsub.s32 1, %v308_v6  ;;  %v309_v10 = vsub.s32 0, %v308_v6  ;;  %v2124_v16 = vld [vmem:[%s2626_s1 + $0x4] sm:$0xf]  ;;  %vm603_vm5 = vcmask 7168  }
  0x20   : > { %v2346_v1 = vld [vmem:[%s287_s12] sm:$0xff]  ;;  %s2272_s19 = smov 111   ;;  %s2273_s20 = smov 112   ;;  %v2132_v33 = vld [vmem:[%s2626_s1 + $0x8] sm:$0xf]  ;;  %vm780_vm6 = vcmask 1039360  }
  0x21   : > { %320 = vrot.lane.b32.xlu1 %v2346_v1, %s2265_s13  ;;  %296 = vrot.lane.b32.xlu0 %v2346_v1, %s2266_s14  ;;  %v2354_v2 = vcombine.high %v2346_v1, %v2346_v1  ;;  %v2399_v18 = vrot.slane %v2131_v12, %v313_v9  ;;  %v2401_v19 = vrot.slane %v305_v11, %v313_v9  ;;  %v319_v32 = vld [vmem:[%s2626_s1] sm:$0xf]  ;;  %v2136_v40 = vld [vmem:[%s2626_s1 + $0xc] sm:$0xf]  ;;  %vm875_vm7 = vcmask 924672   ;;  %s2195_s21 = sld [smem:[#allocation2 + $0x1]] }
  0x22   : > { %v2403_v20 = vrot.slane %v305_v11, %v309_v10  ;;  %v2405_v21 = vrot.slane %v2131_v12, %v309_v10  ;;  %v2140_v41 = vld [vmem:[%s2626_s1 + $0x10] sm:$0xf]  ;;  %v2144_v48 = vld [vmem:[%s2626_s1 + $0x14] sm:$0xf]  ;;  %vm1061_vm8 = vcmask 908288   ;;  %vm970_vm9 = vcmask 916480  }
  0x23   : > { %v2148_v55 = vld [vmem:[%s2626_s1 + $0x18] sm:$0xf]  ;;  %v2152_v63 = vld [vmem:[%s2626_s1 + $0x1c] sm:$0xf]  ;;  %v2156_v6 = vld [vmem:[%s2626_s1 + $0x20] sm:$0xf] }
  0x24   : > { %vm2002_vm10 = vcmask 1040384   ;;  %vm2004_vm11 = vcmask 1044480  }
  0x25   : > { %491 = vrot.lane.b32.xlu0 %v2346_v1, %s2267_s15  ;;  %322 = vrot.lane.b32.xlu1 %v2354_v2, %s2265_s13 }
  0x29   : > { %493 = vrot.lane.b32.xlu1 %v2354_v2, %s2267_s15  ;;  %298 = vrot.lane.b32.xlu0 %v2354_v2, %s2266_s14 }
  0x2d   : > { %601 = vrot.lane.b32.xlu1 %v2354_v2, %s2268_s16  ;;  %599 = vrot.lane.b32.xlu0 %v2346_v1, %s2268_s16 }
  0x31   : > { %776 = vrot.lane.b32.xlu1 %v2346_v1, %s2269_s17  ;;  %778 = vrot.lane.b32.xlu0 %v2354_v2, %s2269_s17 }
  0x35   : > { %871 = vrot.lane.b32.xlu1 %v2346_v1, %s2270_s18  ;;  %873 = vrot.lane.b32.xlu0 %v2354_v2, %s2270_s18 }
  0x39   : > { %1059 = vrot.lane.b32.xlu1 %v2354_v2, %s2272_s19  ;;  %968 = vrot.lane.b32.xlu0 %v2354_v2, %s2273_s20 }
  0x3d   : > { %1057 = vrot.lane.b32.xlu1 %v2346_v1, %s2272_s19  ;;  %966 = vrot.lane.b32.xlu0 %v2346_v1, %s2273_s20 }
  0x41   : > { %1155 = vperm.xlu0 %2230, %v1152_v4  }
  0x93   : > { %v321_v7 = vpop.permute.xlu1 %320  ;;  %v297_v8 = vpop.permute.xlu0 %296 }
  0x94   : > { %v327_v17 = vsel %vm324_vm0, 0.0, %v321_v7  ;;  %v304_v22 = vsel %vm300_vm2, 0.0, %v297_v8 }
  0x95   : > { %v317_v30 = vmul.f32 %v2403_v20, %v304_v22 }
  0x97   : > { %v492_v13 = vpop.permute.xlu0 %491  ;;  %v323_v14 = vpop.permute.xlu1 %322 }
  0x98   : > { %v325_v15 = vsel %vm324_vm0, %v321_v7, %v323_v14  ;;  %v499_v23 = vsel %vm495_vm3, 0.0, %v492_v13 }
  0x99   : > { %2125 = vmatprep.subr.msk.mxu0 %vm334_vm1, %v325_v15  ;;  %v513_v31 = vmul.f32 %v2405_v21, %v499_v23 }
  0x9a   : > { %2126 = vmatpush1.msk.msra.mxu0 %vm334_vm1, %v327_v17 }
  0x9b   : > { %v494_v24 = vpop.permute.xlu1 %493  ;;  %v299_v25 = vpop.permute.xlu0 %298  ;;  %2127 = vmatmul.mubr.msk.f32.vlgmr.msra.gmra.mxu0 %vm330_vm4, %v2124_v16 }
  0x9c   : > { %v496_v26 = vsel %vm495_vm3, %v492_v13, %v494_v24  ;;  %v301_v27 = vsel %vm300_vm2, %v297_v8, %v299_v25  ;;  %590 = vmatprep.mubr.f32.mxu0 %v2264_v0 }
  0x9d   : > { %v514_v28 = vmul.f32 %v2399_v18, %v496_v26  ;;  %v318_v29 = vmul.f32 %v2401_v19, %v301_v27 }
  0x9f   : > { %2133 = vmatprep.subr.msk.mxu0 %vm334_vm1, %v514_v28  ;;  %v602_v34 = vpop.permute.xlu1 %601  ;;  %2128 = vmatprep.subr.msk.mxu1 %vm334_vm1, %v318_v29  ;;  %v600_v35 = vpop.permute.xlu0 %599 }
  0xa0   : > { %v604_v36 = vsel %vm603_vm5, %v600_v35, %v602_v34  ;;  %v607_v37 = vsel %vm603_vm5, 0.0, %v600_v35  ;;  %2129 = vmatpush1.msk.msra.mxu1 %vm334_vm1, %v317_v30  ;;  %2134 = vmatpush1.msk.msra.mxu0 %vm334_vm1, %v513_v31 }
  0xa1   : > { %v608_v38 = vmul.f32 %v607_v37, %v2403_v20  ;;  %v609_v39 = vmul.f32 %v604_v36, %v2401_v19  ;;  %2130 = vmatmul.mubr.msk.f32.vlgmr.msra.gmra.mxu1 %vm330_vm4, %v319_v32  ;;  %2135 = vmatmul.mubr.msk.f32.vlgmr.msra.gmra.mxu0 %vm330_vm4, %v2132_v33 }
  0xa2   : > { %685 = vmatprep.mubr.f32.mxu1 %v2264_v0  ;;  %2141 = vmatprep.subr.msk.mxu0 %vm334_vm1, %v2354_v2 }
  0xa3   : > { %v777_v42 = vpop.permute.xlu1 %776  ;;  %2137 = vmatprep.subr.msk.mxu1 %vm334_vm1, %v609_v39  ;;  %v779_v43 = vpop.permute.xlu0 %778  ;;  %2142 = vmatpush1.msk.msra.mxu0 %vm334_vm1, %v2346_v1 }
  0xa4   : > { %v781_v44 = vsel %vm780_vm6, %v777_v42, %v779_v43  ;;  %v784_v45 = vsel %vm780_vm6, %v779_v43, 0.0  ;;  %2138 = vmatpush1.msk.msra.mxu1 %vm334_vm1, %v608_v38  ;;  %767 = vmatprep.mubr.f32.mxu0 %v2264_v0 }
  0xa5   : > { %v785_v46 = vmul.f32 %v781_v44, %v2405_v21  ;;  %v786_v47 = vmul.f32 %v784_v45, %v2399_v18  ;;  %2139 = vmatmul.mubr.msk.f32.vlgmr.msra.gmra.mxu1 %vm330_vm4, %v2136_v40  ;;  %2143 = vmatmul.mubr.msk.f32.vlgmr.msra.gmra.mxu0 %vm330_vm4, %v2140_v41 }
  0xa6   : > { %862 = vmatprep.mubr.f32.mxu1 %v2264_v0  ;;  %957 = vmatprep.mubr.f32.mxu0 %v2264_v0 }
  0xa7   : > { %v872_v49 = vpop.permute.xlu1 %871  ;;  %2145 = vmatprep.subr.msk.mxu1 %vm334_vm1, %v786_v47  ;;  %v874_v50 = vpop.permute.xlu0 %873 }
  0xa8   : > { %v876_v51 = vsel %vm875_vm7, %v872_v49, %v874_v50  ;;  %v879_v52 = vsel %vm875_vm7, %v874_v50, 0.0  ;;  %2146 = vmatpush1.msk.msra.mxu1 %vm334_vm1, %v785_v46  ;;  %v1985_v50 = vld [vmem:[%s2629_s4] sm:$0xf] }
  0xa9   : > { %v880_v53 = vmul.f32 %v876_v51, %v2403_v20  ;;  %v881_v54 = vmul.f32 %v879_v52, %v2401_v19  ;;  %2147 = vmatmul.mubr.msk.f32.vlgmr.msra.gmra.mxu1 %vm330_vm4, %v2144_v48 }
  0xaa   : > { %1048 = vmatprep.mubr.f32.mxu1 %v2264_v0 }
  0xab   : > { %v1060_v56 = vpop.permute.xlu1 %1059  ;;  %2149 = vmatprep.subr.msk.mxu0 %vm334_vm1, %v881_v54  ;;  %v969_v57 = vpop.permute.xlu0 %968 }
  0xac   : > { %v1065_v58 = vsel %vm1061_vm8, %v1060_v56, 0.0  ;;  %v973_v59 = vsel %vm970_vm9, %v969_v57, 0.0  ;;  %2150 = vmatpush1.msk.msra.mxu0 %vm334_vm1, %v880_v53 }
  0xad   : > { %v1067_v60 = vmul.f32 %v1065_v58, %v2399_v18  ;;  %2151 = vmatmul.mubr.msk.f32.vlgmr.msra.gmra.mxu0 %vm330_vm4, %v2148_v55  ;;  %2153 = vmatprep.subr.msk.mxu1 %vm334_vm1, %v973_v59 }
  0xae   : > { %1143 = vmatprep.mubr.f32.mxu0 %v2264_v0 }
  0xaf   : > { %v1058_v61 = vpop.permute.xlu1 %1057  ;;  %2157 = vmatprep.subr.msk.mxu0 %vm334_vm1, %v1067_v60  ;;  %v967_v62 = vpop.permute.xlu0 %966 }
  0xb0   : > { %v1062_v3 = vsel %vm1061_vm8, %v1058_v61, %v1060_v56  ;;  %v971_v4 = vsel %vm970_vm9, %v967_v62, %v969_v57  ;;  %v1174_v61 = vld [vmem:[%s2628_s3] sm:$0xf] }
  0xb1   : > { %v1066_v5 = vmul.f32 %v1062_v3, %v2405_v21  ;;  %2154 = vmatpush1.msk.msra.mxu1 %vm334_vm1, %v971_v4  ;;  %v2160_v4 = vld [vmem:[%s2628_s3 + $0x4] sm:$0xf] }
  0xb2   : > { %2155 = vmatmul.mubr.msk.f32.vlgmr.msra.gmra.mxu1 %vm330_vm4, %v2152_v63 }
  0xb3   : > { %2158 = vmatpush1.msk.msra.mxu0 %vm334_vm1, %v1066_v5  ;;  %1256 = vmatprep.mubr.f32.mxu1 %v2264_v0 }
  0xb4   : > { %2159 = vmatmul.mubr.msk.f32.vlgmr.msra.gmra.mxu0 %vm330_vm4, %v2156_v6 }
  0xb5   : > { %1336 = vmatprep.mubr.f32.mxu0 %v2264_v0 }
  0xbc   : > { %v1156_v39 = vpop.permute.xlu0 %1155 }
 0x15b   : > { %v406_v7 = vpop.f32.mrf.mxu0 }
 0x15d   : > { %v408_v8 = vpop.f32.mrf.mxu0 }
 0x161   : > { %v486_v9 = vpop.f32.mrf.mxu1  ;;  %v592_v10 = vpop.f32.mrf.mxu0 }
 0x162   : > { %v487_v11 = vadd.f32 %v486_v9, %v406_v7 }
 0x163   : > { %v488_v12 = vpop.f32.mrf.mxu1  ;;  %v594_v13 = vpop.f32.mrf.mxu0 }
 0x164   : > { %v489_v14 = vadd.f32 %v488_v12, %v408_v8  ;;  %v597_v15 = vadd.f32 %v592_v10, %v487_v11 }
 0x165   : > { %v687_v16 = vpop.f32.mrf.mxu1  ;;  %v769_v17 = vpop.f32.mrf.mxu0 }
 0x166   : > { %v598_v22 = vadd.f32 %v594_v13, %v489_v14  ;;  %v692_v23 = vadd.f32 %v687_v16, %v597_v15  ;;  %v2167_v13 = vld [vmem:[%s2628_s3 + $0x8] sm:$0xf] }
 0x167   : > { %v689_v24 = vpop.f32.mrf.mxu1  ;;  %v771_v26 = vpop.f32.mrf.mxu0 }
 0x168   : > { %v693_v25 = vadd.f32 %v689_v24, %v598_v22  ;;  %v774_v27 = vadd.f32 %v769_v17, %v692_v23 }
 0x169   : > { %v864_v28 = vpop.f32.mrf.mxu1 }
 0x16a   : > { %v775_v29 = vadd.f32 %v771_v26, %v693_v25  ;;  %v869_v31 = vadd.f32 %v864_v28, %v774_v27  ;;  %v2171_v27 = vld [vmem:[%s2628_s3 + $0xc] sm:$0xf] }
 0x16b   : > { %v866_v30 = vpop.f32.mrf.mxu1 }
 0x16c   : > { %v870_v33 = vadd.f32 %v866_v30, %v775_v29  ;;  %v2175_v29 = vld [vmem:[%s2628_s3 + $0x10] sm:$0xf] }
 0x16d   : > { %v959_v32 = vpop.f32.mrf.mxu0 }
 0x16e   : > { %v964_v35 = vadd.f32 %v959_v32, %v869_v31 }
 0x16f   : > { %v961_v34 = vpop.f32.mrf.mxu0 }
 0x170   : > { %v965_v37 = vadd.f32 %v961_v34, %v870_v33 }
 0x172   : > { %v1050_v36 = vpop.f32.mrf.mxu1 }
 0x173   : > { %v1055_v38 = vadd.f32 %v1050_v36, %v964_v35  ;;  %v2179_v35 = vld [vmem:[%s2628_s3 + $0x14] sm:$0xf]  ;;  %v2183_v36 = vld [vmem:[%s2628_s3 + $0x18] sm:$0xf] }
 0x174   : > { %v1052_v40 = vpop.f32.mrf.mxu1  ;;  %v1145_v41 = vpop.f32.mrf.mxu0 }
 0x175   : > { %v1056_v42 = vadd.f32 %v1052_v40, %v965_v37  ;;  %v1150_v43 = vadd.f32 %v1145_v41, %v1055_v38  ;;  %v2187_v40 = vld [vmem:[%s2628_s3 + $0x1c] sm:$0xf] }
 0x176   : > { %v1147_v44 = vpop.f32.mrf.mxu0 }
 0x177   : > { %v1158_v45 = vadd.f32 %v1156_v39, %v1150_v43  ;;  %v1151_v46 = vadd.f32 %v1147_v44, %v1056_v42  ;;  %v2191_v43 = vld [vmem:[%s2628_s3 + $0x20] sm:$0xf] }
 0x179   : > { %v2494_v47 = vmax.f32 %v1158_v45, 0.0  ;;  %v1159_v48 = vadd.f32 %v1156_v39, %v1151_v46 }
 0x17b   : > { %1175 = vrot.lane.b32.xlu0 %v2494_v47, %s2265_s13  ;;  %1164 = vrot.lane.b32.xlu1 %v2494_v47, %s2266_s14  ;;  %v1161_v49 = vmax.f32 %v1159_v48, 0.0 }
 0x17f   : > { %1343 = vrot.lane.b32.xlu0 %v2494_v47, %s2267_s15  ;;  %1613 = vrot.lane.b32.xlu1 %v2494_v47, %s2269_s17 }
 0x183   : > { %1437 = vrot.lane.b32.xlu0 %v2494_v47, %s2268_s16  ;;  %1166 = vrot.lane.b32.xlu1 %v1161_v49, %s2266_s14  ;;  %s2196_s14 = sld [smem:[#allocation2 + $0x2]] }
 0x187   : > { %1615 = vrot.lane.b32.xlu0 %v1161_v49, %s2269_s17  ;;  %1177 = vrot.lane.b32.xlu1 %v1161_v49, %s2265_s13  ;;  %s2006_s13 = sld [smem:[#allocation2]]  ;;  %s292_s17 = scalar_lea.vmem %s2632_s7, %s2199_s9 }
 0x18b   : > { %1709 = vrot.lane.b32.xlu0 %v1161_v49, %s2270_s18  ;;  %1345 = vrot.lane.b32.xlu1 %v1161_v49, %s2267_s15 }
 0x18f   : > { %1803 = vrot.lane.b32.xlu0 %v1161_v49, %s2273_s20  ;;  %1439 = vrot.lane.b32.xlu1 %v1161_v49, %s2268_s16 }
 0x193   : > { %1801 = vrot.lane.b32.xlu0 %v2494_v47, %s2273_s20  ;;  %1707 = vrot.lane.b32.xlu1 %v2494_v47, %s2270_s18 }
 0x197   : > { %1988 = vperm.xlu0 %2230, %v1985_v50   ;;  %1893 = vrot.lane.b32.xlu1 %v1161_v49, %s2272_s19 }
 0x19b   : > { %1891 = vrot.lane.b32.xlu1 %v2494_v47, %s2272_s19 }
 0x1ed   : > { %v1176_v51 = vpop.permute.xlu0 %1175  ;;  %v1165_v52 = vpop.permute.xlu1 %1164 }
 0x1ee   : > { %v1171_v55 = vsel %vm300_vm2, 0.0, %v1165_v52  ;;  %v1181_v5 = vsel %vm324_vm0, 0.0, %v1176_v51 }
 0x1ef   : > { %v1172_v60 = vmul.f32 %v1171_v55, %v2403_v20 }
 0x1f1   : > { %v1344_v53 = vpop.permute.xlu0 %1343  ;;  %v1614_v54 = vpop.permute.xlu1 %1613 }
 0x1f2   : > { %v1350_v6 = vsel %vm495_vm3, 0.0, %v1344_v53 }
 0x1f3   : > { %v1351_v11 = vmul.f32 %v1350_v6, %v2405_v21 }
 0x1f5   : > { %v1438_v56 = vpop.permute.xlu0 %1437  ;;  %v1167_v57 = vpop.permute.xlu1 %1166 }
 0x1f6   : > { %v1168_v58 = vsel %vm300_vm2, %v1165_v52, %v1167_v57  ;;  %v1444_v14 = vsel %vm603_vm5, 0.0, %v1438_v56 }
 0x1f7   : > { %v1173_v59 = vmul.f32 %v1168_v58, %v2401_v19  ;;  %v1445_v26 = vmul.f32 %v1444_v14, %v2403_v20 }
 0x1f9   : > { %v1616_v62 = vpop.permute.xlu0 %1615  ;;  %2164 = vmatprep.subr.msk.mxu0 %vm334_vm1, %v1173_v59  ;;  %v1178_v63 = vpop.permute.xlu1 %1177 }
 0x1fa   : > { %v1179_v3 = vsel %vm324_vm0, %v1176_v51, %v1178_v63  ;;  %2165 = vmatpush1.msk.msra.mxu0 %vm334_vm1, %v1172_v60  ;;  %v1620_v16 = vsel %vm780_vm6, %v1616_v62, 0.0  ;;  %v1617_v23 = vsel %vm780_vm6, %v1614_v54, %v1616_v62 }
 0x1fb   : > { %2161 = vmatprep.subr.msk.mxu1 %vm334_vm1, %v1179_v3  ;;  %2166 = vmatmul.mubr.msk.f32.vlgmr.msra.gmra.mxu0 %vm330_vm4, %v1174_v61  ;;  %v1622_v28 = vmul.f32 %v1620_v16, %v2399_v18  ;;  %v1621_v30 = vmul.f32 %v1617_v23, %v2405_v21 }
 0x1fc   : > { %2162 = vmatpush1.msk.msra.mxu1 %vm334_vm1, %v1181_v5  ;;  %1522 = vmatprep.mubr.f32.mxu0 %v2264_v0 }
 0x1fd   : > { %v1710_v7 = vpop.permute.xlu0 %1709  ;;  %v1346_v8 = vpop.permute.xlu1 %1345  ;;  %2163 = vmatmul.mubr.msk.f32.vlgmr.msra.gmra.mxu1 %vm330_vm4, %v2160_v4 }
 0x1fe   : > { %v1347_v9 = vsel %vm495_vm3, %v1344_v53, %v1346_v8  ;;  %1428 = vmatprep.mubr.f32.mxu1 %v2264_v0  ;;  %v1714_v12 = vsel %vm875_vm7, %v1710_v7, 0.0 }
 0x1ff   : > { %v1352_v10 = vmul.f32 %v1347_v9, %v2399_v18  ;;  %v1716_v24 = vmul.f32 %v1714_v12, %v2401_v19 }
 0x201   : > { %2168 = vmatprep.subr.msk.mxu1 %vm334_vm1, %v1352_v10  ;;  %v1440_v15 = vpop.permute.xlu1 %1439  ;;  %v1804_v17 = vpop.permute.xlu0 %1803 }
 0x202   : > { %v1441_v22 = vsel %vm603_vm5, %v1438_v56, %v1440_v15  ;;  %2169 = vmatpush1.msk.msra.mxu1 %vm334_vm1, %v1351_v11  ;;  %v1807_v33 = vsel %vm970_vm9, %v1804_v17, 0.0 }
 0x203   : > { %v1446_v25 = vmul.f32 %v1441_v22, %v2401_v19  ;;  %2176 = vmatprep.subr.msk.mxu1 %vm334_vm1, %v1161_v49  ;;  %2170 = vmatmul.mubr.msk.f32.vlgmr.msra.gmra.mxu1 %vm330_vm4, %v2167_v13 }
 0x204   : > { %2177 = vmatpush1.msk.msra.mxu1 %vm334_vm1, %v2494_v47  ;;  %1604 = vmatprep.mubr.f32.mxu1 %v2264_v0 }
 0x205   : > { %2172 = vmatprep.subr.msk.mxu0 %vm334_vm1, %v1446_v25  ;;  %2184 = vmatprep.subr.msk.mxu1 %vm334_vm1, %v1716_v24  ;;  %v1708_v19 = vpop.permute.xlu1 %1707  ;;  %v1802_v34 = vpop.permute.xlu0 %1801 }
 0x206   : > { %v1711_v31 = vsel %vm875_vm7, %v1708_v19, %v1710_v7  ;;  %2173 = vmatpush1.msk.msra.mxu0 %vm334_vm1, %v1445_v26  ;;  %v1805_v38 = vsel %vm970_vm9, %v1802_v34, %v1804_v17  ;;  %v2017_v19 = vstv %s2196_s14 }
 0x207   : > { %v1715_v32 = vmul.f32 %v1711_v31, %v2403_v20  ;;  %2174 = vmatmul.mubr.msk.f32.vlgmr.msra.gmra.mxu0 %vm330_vm4, %v2171_v27  ;;  %2180 = vmatprep.subr.msk.mxu0 %vm334_vm1, %v1622_v28  ;;  %v2010_v28 = vstv %s2195_s21 }
 0x208   : > { %2181 = vmatpush1.msk.msra.mxu0 %vm334_vm1, %v1621_v30  ;;  %2178 = vmatmul.mubr.msk.f32.vlgmr.msra.gmra.mxu1 %vm330_vm4, %v2175_v29  ;;  %v2007_v30 = vstv %s2006_s13 }
 0x209   : > { %2185 = vmatpush1.msk.msra.mxu1 %vm334_vm1, %v1715_v32  ;;  %2188 = vmatprep.subr.msk.mxu0 %vm334_vm1, %v1807_v33  ;;  %v1894_v20 = vpop.permute.xlu1 %1893 }
 0x20a   : > { %v1898_v37 = vsel %vm1061_vm8, %v1894_v20, 0.0  ;;  %1698 = vmatprep.mubr.f32.mxu0 %v2264_v0  ;;  %1792 = vmatprep.mubr.f32.mxu1 %v2264_v0 }
 0x20b   : > { %v1900_v39 = vmul.f32 %v1898_v37, %v2399_v18  ;;  %2182 = vmatmul.mubr.msk.f32.vlgmr.msra.gmra.mxu0 %vm330_vm4, %v2179_v35 }
 0x20c   : > { %2189 = vmatpush1.msk.msra.mxu0 %vm334_vm1, %v1805_v38  ;;  %2186 = vmatmul.mubr.msk.f32.vlgmr.msra.gmra.mxu1 %vm330_vm4, %v2183_v36 }
 0x20d   : > { %2192 = vmatprep.subr.msk.mxu1 %vm334_vm1, %v1900_v39  ;;  %v1892_v41 = vpop.permute.xlu1 %1891  ;;  %1882 = vmatprep.mubr.f32.mxu0 %v2264_v0 }
 0x20e   : > { %v1895_v42 = vsel %vm1061_vm8, %v1892_v41, %v1894_v20  ;;  %1976 = vmatprep.mubr.f32.mxu1 %v2264_v0 }
 0x20f   : > { %v1899_v18 = vmul.f32 %v1895_v42, %v2405_v21  ;;  %2190 = vmatmul.mubr.msk.f32.vlgmr.msra.gmra.mxu0 %vm330_vm4, %v2187_v40 }
 0x211   : > { %2193 = vmatpush1.msk.msra.mxu1 %vm334_vm1, %v1899_v18 }
 0x212   : > { %2194 = vmatmul.mubr.msk.f32.vlgmr.msra.gmra.mxu1 %vm330_vm4, %v2191_v43  ;;  %v1989_v13 = vpop.permute.xlu0 %1988 }
 0x2bb   : > { %v1338_v45 = vpop.f32.mrf.mxu0 }
 0x2bd   : > { %v1258_v44 = vpop.f32.mrf.mxu1  ;;  %v1340_v48 = vpop.f32.mrf.mxu0 }
 0x2be   : > { %v1339_v47 = vadd.f32 %v1338_v45, %v1258_v44 }
 0x2bf   : > { %v1260_v46 = vpop.f32.mrf.mxu1 }
 0x2c0   : > { %v1341_v50 = vadd.f32 %v1340_v48, %v1260_v46 }
 0x2c3   : > { %v1430_v49 = vpop.f32.mrf.mxu1 }
 0x2c4   : > { %v1435_v0 = vadd.f32 %v1430_v49, %v1339_v47 }
 0x2c5   : > { %v1432_v51 = vpop.f32.mrf.mxu1 }
 0x2c6   : > { %v1436_v52 = vadd.f32 %v1432_v51, %v1341_v50 }
 0x2c7   : > { %v1524_v21 = vpop.f32.mrf.mxu0 }
 0x2c8   : > { %v1529_v53 = vadd.f32 %v1524_v21, %v1435_v0  ;;  %v1606_v54 = vpop.f32.mrf.mxu1 }
 0x2c9   : > { %v1526_v55 = vpop.f32.mrf.mxu0 }
 0x2ca   : > { %v1530_v56 = vadd.f32 %v1526_v55, %v1436_v52  ;;  %v1611_v57 = vadd.f32 %v1606_v54, %v1529_v53  ;;  %v1608_v58 = vpop.f32.mrf.mxu1 }
 0x2cb   : > { %v1700_v59 = vpop.f32.mrf.mxu0 }
 0x2cc   : > { %v1612_v60 = vadd.f32 %v1608_v58, %v1530_v56  ;;  %v1705_v61 = vadd.f32 %v1700_v59, %v1611_v57  ;;  %v1794_v62 = vpop.f32.mrf.mxu1 }
 0x2cd   : > { %v1702_v63 = vpop.f32.mrf.mxu0 }
 0x2ce   : > { %v1706_v3 = vadd.f32 %v1702_v63, %v1612_v60  ;;  %v1799_v4 = vadd.f32 %v1794_v62, %v1705_v61  ;;  %v1796_v5 = vpop.f32.mrf.mxu1 }
 0x2cf   : > { %v1884_v6 = vpop.f32.mrf.mxu0 }
 0x2d0   : > { %v1800_v7 = vadd.f32 %v1796_v5, %v1706_v3  ;;  %v1889_v8 = vadd.f32 %v1884_v6, %v1799_v4 }
 0x2d1   : > { %v1886_v9 = vpop.f32.mrf.mxu0 }
 0x2d2   : > { %v1890_v10 = vadd.f32 %v1886_v9, %v1800_v7  ;;  %v1978_v11 = vpop.f32.mrf.mxu1 }
 0x2d3   : > { %v1983_v12 = vadd.f32 %v1978_v11, %v1889_v8 }
 0x2d4   : > { %v1980_v14 = vpop.f32.mrf.mxu1 }
 0x2d5   : > { %v1991_v15 = vadd.f32 %v1989_v13, %v1983_v12  ;;  %v1984_v16 = vadd.f32 %v1980_v14, %v1890_v10 }
 0x2d7   : > { %v1992_v17 = vadd.f32 %v1989_v13, %v1984_v16  ;;  %v1993_v22 = vsel %vm334_vm1, %v1991_v15, 0.0 }
 0x2d9   : > { %v1994_v23 = vsel %vm334_vm1, %v1992_v17, 0.0 }
 0x2da   : > { %v1995_v24 = vadd.f32 %v1994_v23, %v1993_v22 }
 0x2dc   : > { %1996 = vadd.xlane.f32.xlu1 %v1995_v24 }
 0x365   : > { %v1997_v25 = vpop.xlane.xlu1 %1996 }
 0x366   : > { %v1998_v26 = vmul.f32 0.00390625, %v1997_v25 }
 0x368   : > { %v2000_v27 = vrot.slane %v1998_v26, 7 }
 0x36a   : > { %v2003_v29 = vsel %vm2002_vm10, 0.0, %v2000_v27 }
 0x36b   : > { %v2005_v31 = vsel %vm2004_vm11, %v2003_v29, 0.0 }
 0x36c   : > { %v2011_v32 = vmul.f32 %v2010_v28, %v2005_v31  ;;  %v2018_v33 = vmul.f32 %v2017_v19, %v2005_v31  ;;  %v2008_v34 = vmul.f32 %v2007_v30, %v2005_v31 }
 0x36e   : > { %v2013_v35 = vrot.slane %v2011_v32, 1  ;;  %v2020_v36 = vrot.slane %v2018_v33, 2 }
 0x370   : > { %v2015_v20 = vadd.f32 %v2013_v35, %v2008_v34 }
 0x372   : > { %v2022_v37 = vadd.f32 %v2020_v36, %v2015_v20 }
 0x374   : > { %v2023_v38 = vsub.f32 0.0, %v2022_v37 }
 0x376   : > { %v2024_v39 = vmul.f32 1.442695, %v2023_v38 }
 0x378   : > { %2232 = vpow2.f32 %v2024_v39 }
 0x385   : > { %v2233_v40 = vpop.eup %2232 }
 0x386   : > { %v2026_v41 = vadd.f32 1.0, %v2233_v40 }
 0x388   : > { %2234 = vrcp.f32 %v2026_v41 }
 0x395   : > { %v2235_v42 = vpop.eup %2234 }
 0x396   : > { %2031 = vperm.xlu0 %2230, %v2235_v42  }
 0x411   : > { %v2032_v18 = vpop.permute.xlu0 %2031 }
 0x412   : > { %v2034_v43 = vmul.f32 %v2032_v18, %v1991_v15  ;;  %v2035_v44 = vmul.f32 %v2032_v18, %v1992_v17 }
 0x414   : > { %v2037_v45 = vadd.f32 %v2034_v43, %v2346_v1  ;;  %v2038_v46 = vadd.f32 %v2035_v44, %v2354_v2 }
 0x416   : > { %v2039_v47 = vmax.f32 %v2037_v45, 0.0  ;;  %v2040_v48 = vmax.f32 %v2038_v46, 0.0 }
 0x418   : > { %v2043_v49 = vcombine.low %v2039_v47, %v2040_v48 }
 0x41a   : > { %2045 = vst [vmem:[%s292_s17] sm:$0xff] %v2043_v49 }
 0x41b PF: > { %s18_s24 = sadd.s32 1, %s2261_s24  }
 0x41c   : > { %p15_p1 = scmp.ge.s32.totalorder %s18_s24, 4  }
 0x41e   :  { %17 = sbr.rel (!%p15_p1) target bundleno = 1 (0x1), region = 100 }
 0x423   :  { %2067 = vsyncpa [#allocation3], 1 }
 0x424   :  { %2069 = vsyncpa [#allocation3 + $0x1], 1 }

</bundles_post_ra>
